<compile_context>
chip_gen: v6e
topology: v6e:2x2x1
jax: 0.10.0
libtpu: 0.0.40
codegen_flags: <defaults>
</compile_context>

<pallas_src>
import functools
import math

import jax
import jax.numpy as jnp
from jax.experimental import pallas as pl
from jax.experimental.pallas import tpu as pltpu

FEATS = 32
H1 = 32
H2 = 32
OUT = 1

MAX_TILE_ROWS = 256       # batch tile cap: amortises per-grid-step overhead
K_PACK = 3 * FEATS        # packed contraction dim: [m | s | m*m]
WCOL = 2 * H1             # packed per-layer output width (o_m block | o_s block)

_RELU_SCALE = math.sqrt(8.0 / math.pi)
_INV_SQRT_2PI = 1.0 / math.sqrt(2.0 * math.pi)
_XI_SQ = math.pi / 8.0
_ALPHA = 4.0 - 2.0 * math.sqrt(2.0)
_BETA = -math.log(math.sqrt(2.0) + 1.0)
_EPS = 1e-6


# ---------------------------------------------------------------------------
# NPN activation math (shared by kernel body and pure-jnp reference).
# ---------------------------------------------------------------------------

def _npn_relu(o_m, o_s):
    o_s = jnp.maximum(o_s, _EPS)               # guard rsqrt/exp against o_s -> 0
    inv = jax.lax.rsqrt(o_s)                   # EUP
    t = o_m * inv
    sig = jax.nn.sigmoid(_RELU_SCALE * t)
    gauss = (o_s * inv) * _INV_SQRT_2PI * jnp.exp(-0.5 * t * t)   # sqrt(o_s)*pdf
    a_m = sig * o_m + gauss
    a_s = sig * (o_m * o_m + o_s) + o_m * gauss - a_m * a_m
    a_s = jnp.maximum(a_s, _EPS)               # variance can cancel negative in f32
    return a_m, a_s


def _npn_sigmoid(o_m, o_s):
    a_m = jax.nn.sigmoid(o_m * jax.lax.rsqrt(1.0 + _XI_SQ * o_s))
    a_s = jax.nn.sigmoid(_ALPHA * (o_m + _BETA)
                         * jax.lax.rsqrt(1.0 + _XI_SQ * _ALPHA * _ALPHA * o_s)) - a_m * a_m
    a_s = jnp.maximum(a_s, 0.0)                # variance is non-negative
    return a_m, a_s


# ---------------------------------------------------------------------------
# Pallas kernel: whole MLP for one batch tile, one MXU call per layer.
# ---------------------------------------------------------------------------

def _packed_layer(m, s, rhs, bias, fan_out):
    """NPNLinear as a single matmul against the host-packed RHS.

    lhs = [m | s | m*m]                      (rows, 3*fan_in)
    rhs = [[W_m, 0          ],
           [0,   W_s + W_m^2],
           [0,   W_s        ]]               (3*fan_in, 2*fan_out), zero-padded to WCOL
    """
    lhs = jnp.concatenate([m, s, m * m], axis=-1)
    o = jnp.dot(lhs, rhs, preferred_element_type=jnp.float32) + bias
    return o[:, :fan_out], o[:, fan_out:2 * fan_out]


def npn_kernel(x_ref, w_ref, b_ref, out_ref):
    x = x_ref[...]                                           # (tile, FEATS)

    # NPNLinear(feats, 32, dual_input=False): x_m = x, x_s = x * x
    m, s = _packed_layer(x, x * x, w_ref[0], b_ref[0], H1)
    m, s = _npn_relu(m, s)
    # NPNLinear(32, 32)
    m, s = _packed_layer(m, s, w_ref[1], b_ref[1], H2)
    m, s = _npn_relu(m, s)
    # NPNLinear(32, 1) + NPNSigmoid
    m, s = _packed_layer(m, s, w_ref[2], b_ref[2], OUT)
    a_m, a_s = _npn_sigmoid(m, s)

    out_ref[...] = jnp.concatenate([a_m, a_s], axis=-1)      # (tile, 2)


# ---------------------------------------------------------------------------
# Wrappers.
# ---------------------------------------------------------------------------

@jax.jit
def npn_forward_batched(xb, w_slab, b_slab):
    """NPN MLP on a batch of rows. Returns (B, 2): [:, 0] = mean, [:, 1] = var."""
    xb = xb.astype(jnp.float32)
    batch, feats = xb.shape
    assert feats == FEATS
    # Adaptive row tile: >= 8 sublanes, cap at MAX_TILE_ROWS so big batches
    # still amortise per-step overhead while B=1 pads to only 8 rows.
    tile = min(MAX_TILE_ROWS, max(8, ((batch + 7) // 8) * 8))
    n_tiles = pl.cdiv(batch, tile)
    padded = n_tiles * tile
    x_pad = jnp.pad(xb, ((0, padded - batch), (0, 0)))

    out = pl.pallas_call(
        npn_kernel,
        grid=(n_tiles,),
        in_specs=[
            pl.BlockSpec((tile, FEATS), lambda i: (i, 0)),
            # weight / bias slabs: full-array blocks with constant index_map ->
            # fetched once and held VMEM-resident across all batch tiles.
            pl.BlockSpec((3, K_PACK, WCOL), lambda i: (0, 0, 0)),
            pl.BlockSpec((3, 1, WCOL), lambda i: (0, 0, 0)),
        ],
        out_specs=pl.BlockSpec((tile, 2), lambda i: (i, 0)),
        out_shape=jax.ShapeDtypeStruct((padded, 2), jnp.float32),
        compiler_params=pltpu.CompilerParams(
            dimension_semantics=("parallel",)),   # shard batch tiles across TCs (v7x)
    )(x_pad, w_slab, b_slab)
    return out[:batch]


def npn_forward(x, w_slab, b_slab):
    """Equivalent of npn.forward: x.view(1,-1) -> (mean (1,1), s (1,))."""
    x2d = x.reshape(1, -1)
    out = npn_forward_batched(x2d, w_slab, b_slab)
    return out[:, 0:1], out[:, 1]


# ---------------------------------------------------------------------------
# Deterministic parameter init mirroring NPNLinear.__init__, plus host packing.
# ---------------------------------------------------------------------------

def _linear_params(key, fan_in, fan_out):
    k1, k2, k3 = jax.random.split(key, 3)
    lim = math.sqrt(6.0) / math.sqrt(fan_in + fan_out)
    w_m = (2.0 * lim * (jax.random.uniform(k1, (fan_in, fan_out)) - 0.5)).astype(jnp.float32)
    # W_s_ = softplus^{-1}(0.01*lim*U); forward applies softplus -> fold in.
    # TODO(synk): if loading trained PyTorch weights, apply softplus to W_s_/bias_s_ first.
    w_s = (0.01 * lim * jax.random.uniform(k2, (fan_in, fan_out))).astype(jnp.float32)
    b_m = jnp.zeros((1, fan_out), jnp.float32)
    b_s = (0.01 * jax.random.uniform(k3, (1, fan_out))).astype(jnp.float32)
    return (w_m, w_s, b_m, b_s)


def init_params(key, feats):
    k1, k2, k3 = jax.random.split(key, 3)
    return (_linear_params(k1, feats, H1)
            + _linear_params(k2, H1, H2)
            + _linear_params(k3, H2, OUT))


def pack_params(params):
    """12 arrays -> weight slab (3, 96, 64) + bias slab (3, 1, 64).

    Per layer the packed RHS realises, in one matmul,
        o_m = x_m @ W_m + b_m
        o_s = x_s @ (W_s + W_m*W_m) + (x_m*x_m) @ W_s + b_s
    which is algebraically identical to the reference NPNLinear.
    """
    w_blocks, b_blocks = [], []
    for li in range(3):
        w_m, w_s, b_m, b_s = params[4 * li: 4 * li + 4]
        fi, fo = w_m.shape
        assert 3 * fi == K_PACK and 2 * fo <= WCOL
        z = jnp.zeros((fi, fo), jnp.float32)
        rhs = jnp.concatenate([
            jnp.concatenate([w_m, z], axis=1),
            jnp.concatenate([z, w_s + w_m * w_m], axis=1),
            jnp.concatenate([z, w_s], axis=1),
        ], axis=0)                                        # (3*fi, 2*fo)
        bias = jnp.concatenate([b_m, b_s], axis=1)        # (1, 2*fo)
        rhs = jnp.pad(rhs, ((0, 0), (0, WCOL - 2 * fo)))
        bias = jnp.pad(bias, ((0, 0), (0, WCOL - 2 * fo)))
        w_blocks.append(rhs)
        b_blocks.append(bias)
    return jnp.stack(w_blocks), jnp.stack(b_blocks)


# ---------------------------------------------------------------------------
# Pure-jnp reference (unpacked NPN math, exact-f32 contractions on the VPU).
# ---------------------------------------------------------------------------

def _dot_f32(a, b):
    return jnp.sum(a[:, :, None] * b[None, :, :], axis=1)


def _npn_linear_ref(x_m, x_s, w_m, w_s, b_m, b_s):
    o_m = _dot_f32(x_m, w_m) + b_m
    o_s = (_dot_f32(x_s, w_s) + _dot_f32(x_s, w_m * w_m)
           + _dot_f32(x_m * x_m, w_s) + b_s)
    return o_m, o_s


def reference_forward(xb, p):
    xm = xb.astype(jnp.float32)
    xs = xm * xm
    m, s = _npn_linear_ref(xm, xs, p[0], p[1], p[2], p[3])
    m, s = _npn_relu(m, s)
    m, s = _npn_linear_ref(m, s, p[4], p[5], p[6], p[7])
    m, s = _npn_relu(m, s)
    m, s = _npn_linear_ref(m, s, p[8], p[9], p[10], p[11])
    return _npn_sigmoid(m, s)


# ---------------------------------------------------------------------------

if __name__ == "__main__":
    key = jax.random.PRNGKey(0)
    kx, kb, kp = jax.random.split(key, 3)

    params = init_params(kp, FEATS)
    w_slab, b_slab = pack_params(params)

    # --- module semantics: x.view(1, -1) -> (mean (1,1), s (1,)) ---
    x = jax.random.normal(kx, (FEATS,), dtype=jnp.float32)
    mean, var = npn_forward(x, w_slab, b_slab)
    jax.block_until_ready((mean, var))

    ref_m, ref_s = reference_forward(x.reshape(1, -1), params)
    assert mean.shape == (1, OUT) and var.shape == (1,)
    assert bool(jnp.all(jnp.isfinite(mean))) and bool(jnp.all(jnp.isfinite(var)))
    # MXU default-precision matmul in the kernel vs exact-f32 VPU reference ->
    # allow a modest tolerance (outputs are sigmoids in (0, 1)).
    assert bool(jnp.allclose(mean, ref_m, atol=5e-3, rtol=5e-3))
    assert bool(jnp.allclose(var, ref_s.reshape(-1), atol=5e-3, rtol=5e-3))

    # --- batched path: 512 rows -> 2 grid steps over the parallel batch axis ---
    xb = jax.random.normal(kb, (2 * MAX_TILE_ROWS, FEATS), dtype=jnp.float32)
    out_b = npn_forward_batched(xb, w_slab, b_slab)
    jax.block_until_ready(out_b)
    rb_m, rb_s = reference_forward(xb, params)
    assert out_b.shape == (2 * MAX_TILE_ROWS, 2)
    assert bool(jnp.all(jnp.isfinite(out_b)))
    assert bool(jnp.allclose(out_b[:, 0:1], rb_m, atol=5e-3, rtol=5e-3))
    assert bool(jnp.allclose(out_b[:, 1], rb_s.reshape(-1), atol=5e-3, rtol=5e-3))

    # --- ragged batch (exercises adaptive tile + pad/slice path) ---
    xr = jax.random.normal(kb, (37, FEATS), dtype=jnp.float32)
    out_r = npn_forward_batched(xr, w_slab, b_slab)
    jax.block_until_ready(out_r)
    rr_m, rr_s = reference_forward(xr, params)
    assert out_r.shape == (37, 2)
    assert bool(jnp.allclose(out_r[:, 0:1], rr_m, atol=5e-3, rtol=5e-3))
    assert bool(jnp.allclose(out_r[:, 1], rr_s.reshape(-1), atol=5e-3, rtol=5e-3))

    print("KERNEL_OK")
</pallas_src>

<mosaic_0001>
module attributes {stable_mosaic.version = 11 : i64} {
  func.func @npn_kernel(%arg0: i32, %arg1: memref<8x32xf32, #tpu.memory_space<vmem>>, %arg2: memref<3x96x64xf32, #tpu.memory_space<vmem>>, %arg3: memref<3x1x64xf32, #tpu.memory_space<vmem>>, %arg4: memref<8x2xf32, #tpu.memory_space<vmem>>) attributes {dimension_semantics = [#tpu.dimension_semantics<parallel>], iteration_bounds = array<i64: 1>, scalar_prefetch = 0 : i64, scratch_operands = 0 : i64, tpu.core_type = #tpu.core_type<tc>, window_params = [{transform_indices = @transform_0, window_bounds = array<i64: 8, 32>}, {pipeline_mode = #tpu.pipeline_mode<synchronous>, transform_indices = @transform_1, window_bounds = array<i64: 3, 96, 64>}, {pipeline_mode = #tpu.pipeline_mode<synchronous>, transform_indices = @transform_2, window_bounds = array<i64: 3, 1, 64>}, {transform_indices = @transform_3, window_bounds = array<i64: 8, 2>}]} {
    %c0 = arith.constant 0 : index
    %c0_0 = arith.constant 0 : index
    %0 = vector.load %arg1[%c0, %c0_0] : memref<8x32xf32, #tpu.memory_space<vmem>>, vector<8x32xf32>
    %1 = arith.mulf %0, %0 : vector<8x32xf32>
    %c0_1 = arith.constant 0 : index
    %c0_2 = arith.constant 0 : index
    %c0_3 = arith.constant 0 : index
    %2 = vector.load %arg2[%c0_1, %c0_2, %c0_3] : memref<3x96x64xf32, #tpu.memory_space<vmem>>, vector<1x96x64xf32>
    %3 = vector.shape_cast %2 : vector<1x96x64xf32> to vector<96x64xf32>
    %c0_4 = arith.constant 0 : index
    %c0_5 = arith.constant 0 : index
    %c0_6 = arith.constant 0 : index
    %4 = vector.load %arg3[%c0_4, %c0_5, %c0_6] : memref<3x1x64xf32, #tpu.memory_space<vmem>>, vector<1x1x64xf32>
    %5 = vector.shape_cast %4 : vector<1x1x64xf32> to vector<1x64xf32>
    %6 = arith.mulf %0, %0 : vector<8x32xf32>
    %7 = tpu.concatenate %0, %1, %6 in 1 : vector<8x32xf32>, vector<8x32xf32>, vector<8x32xf32> -> vector<8x96xf32>
    %cst = arith.constant dense<0.000000e+00> : vector<8x64xf32>
    %8 = tpu.matmul %7, %3, %cst {dimension_numbers = #tpu.dot_dimension_numbers<[1], [0], [0], [1], [0, 0, 1, 1], [], []>} : vector<8x96xf32>, vector<96x64xf32>, vector<8x64xf32> -> vector<8x64xf32>
    %9 = vector.broadcast %5 : vector<1x64xf32> to vector<8x64xf32>
    %10 = arith.addf %8, %9 : vector<8x64xf32>
    %11 = vector.extract_strided_slice %10 {offsets = [0, 0], sizes = [8, 32], strides = [1, 1]} : vector<8x64xf32> to vector<8x32xf32>
    %12 = vector.extract_strided_slice %10 {offsets = [0, 32], sizes = [8, 32], strides = [1, 1]} : vector<8x64xf32> to vector<8x32xf32>
    %cst_7 = arith.constant 9.99999997E-7 : f32
    %13 = vector.broadcast %cst_7 : f32 to vector<8x32xf32>
    %14 = arith.maximumf %12, %13 : vector<8x32xf32>
    %15 = math.rsqrt %14 : vector<8x32xf32>
    %16 = arith.mulf %11, %15 : vector<8x32xf32>
    %cst_8 = arith.constant 1.59576917 : f32
    %17 = vector.broadcast %cst_8 : f32 to vector<8x32xf32>
    %18 = arith.mulf %17, %16 : vector<8x32xf32>
    %19 = arith.negf %18 : vector<8x32xf32>
    %20 = math.exp %19 : vector<8x32xf32>
    %cst_9 = arith.constant 1.000000e+00 : f32
    %21 = vector.broadcast %cst_9 : f32 to vector<8x32xf32>
    %22 = arith.addf %21, %20 : vector<8x32xf32>
    %23 = arith.divf %21, %22 : vector<8x32xf32>
    %24 = arith.mulf %14, %15 : vector<8x32xf32>
    %cst_10 = arith.constant 0.398942292 : f32
    %25 = vector.broadcast %cst_10 : f32 to vector<8x32xf32>
    %26 = arith.mulf %24, %25 : vector<8x32xf32>
    %cst_11 = arith.constant -5.000000e-01 : f32
    %27 = vector.broadcast %cst_11 : f32 to vector<8x32xf32>
    %28 = arith.mulf %27, %16 : vector<8x32xf32>
    %29 = arith.mulf %28, %16 : vector<8x32xf32>
    %30 = math.exp %29 : vector<8x32xf32>
    %31 = arith.mulf %26, %30 : vector<8x32xf32>
    %32 = arith.mulf %23, %11 : vector<8x32xf32>
    %33 = arith.addf %32, %31 : vector<8x32xf32>
    %34 = arith.mulf %11, %11 : vector<8x32xf32>
    %35 = arith.addf %34, %14 : vector<8x32xf32>
    %36 = arith.mulf %23, %35 : vector<8x32xf32>
    %37 = arith.mulf %11, %31 : vector<8x32xf32>
    %38 = arith.addf %36, %37 : vector<8x32xf32>
    %39 = arith.mulf %33, %33 : vector<8x32xf32>
    %40 = arith.subf %38, %39 : vector<8x32xf32>
    %cst_12 = arith.constant 9.99999997E-7 : f32
    %41 = vector.broadcast %cst_12 : f32 to vector<8x32xf32>
    %42 = arith.maximumf %40, %41 : vector<8x32xf32>
    %c1 = arith.constant 1 : index
    %c0_13 = arith.constant 0 : index
    %c0_14 = arith.constant 0 : index
    %43 = vector.load %arg2[%c1, %c0_13, %c0_14] : memref<3x96x64xf32, #tpu.memory_space<vmem>>, vector<1x96x64xf32>
    %44 = vector.shape_cast %43 : vector<1x96x64xf32> to vector<96x64xf32>
    %c1_15 = arith.constant 1 : index
    %c0_16 = arith.constant 0 : index
    %c0_17 = arith.constant 0 : index
    %45 = vector.load %arg3[%c1_15, %c0_16, %c0_17] : memref<3x1x64xf32, #tpu.memory_space<vmem>>, vector<1x1x64xf32>
    %46 = vector.shape_cast %45 : vector<1x1x64xf32> to vector<1x64xf32>
    %47 = arith.mulf %33, %33 : vector<8x32xf32>
    %48 = tpu.concatenate %33, %42, %47 in 1 : vector<8x32xf32>, vector<8x32xf32>, vector<8x32xf32> -> vector<8x96xf32>
    %cst_18 = arith.constant dense<0.000000e+00> : vector<8x64xf32>
    %49 = tpu.matmul %48, %44, %cst_18 {dimension_numbers = #tpu.dot_dimension_numbers<[1], [0], [0], [1], [0, 0, 1, 1], [], []>} : vector<8x96xf32>, vector<96x64xf32>, vector<8x64xf32> -> vector<8x64xf32>
    %50 = vector.broadcast %46 : vector<1x64xf32> to vector<8x64xf32>
    %51 = arith.addf %49, %50 : vector<8x64xf32>
    %52 = vector.extract_strided_slice %51 {offsets = [0, 0], sizes = [8, 32], strides = [1, 1]} : vector<8x64xf32> to vector<8x32xf32>
    %53 = vector.extract_strided_slice %51 {offsets = [0, 32], sizes = [8, 32], strides = [1, 1]} : vector<8x64xf32> to vector<8x32xf32>
    %cst_19 = arith.constant 9.99999997E-7 : f32
    %54 = vector.broadcast %cst_19 : f32 to vector<8x32xf32>
    %55 = arith.maximumf %53, %54 : vector<8x32xf32>
    %56 = math.rsqrt %55 : vector<8x32xf32>
    %57 = arith.mulf %52, %56 : vector<8x32xf32>
    %cst_20 = arith.constant 1.59576917 : f32
    %58 = vector.broadcast %cst_20 : f32 to vector<8x32xf32>
    %59 = arith.mulf %58, %57 : vector<8x32xf32>
    %60 = arith.negf %59 : vector<8x32xf32>
    %61 = math.exp %60 : vector<8x32xf32>
    %cst_21 = arith.constant 1.000000e+00 : f32
    %62 = vector.broadcast %cst_21 : f32 to vector<8x32xf32>
    %63 = arith.addf %62, %61 : vector<8x32xf32>
    %64 = arith.divf %62, %63 : vector<8x32xf32>
    %65 = arith.mulf %55, %56 : vector<8x32xf32>
    %cst_22 = arith.constant 0.398942292 : f32
    %66 = vector.broadcast %cst_22 : f32 to vector<8x32xf32>
    %67 = arith.mulf %65, %66 : vector<8x32xf32>
    %cst_23 = arith.constant -5.000000e-01 : f32
    %68 = vector.broadcast %cst_23 : f32 to vector<8x32xf32>
    %69 = arith.mulf %68, %57 : vector<8x32xf32>
    %70 = arith.mulf %69, %57 : vector<8x32xf32>
    %71 = math.exp %70 : vector<8x32xf32>
    %72 = arith.mulf %67, %71 : vector<8x32xf32>
    %73 = arith.mulf %64, %52 : vector<8x32xf32>
    %74 = arith.addf %73, %72 : vector<8x32xf32>
    %75 = arith.mulf %52, %52 : vector<8x32xf32>
    %76 = arith.addf %75, %55 : vector<8x32xf32>
    %77 = arith.mulf %64, %76 : vector<8x32xf32>
    %78 = arith.mulf %52, %72 : vector<8x32xf32>
    %79 = arith.addf %77, %78 : vector<8x32xf32>
    %80 = arith.mulf %74, %74 : vector<8x32xf32>
    %81 = arith.subf %79, %80 : vector<8x32xf32>
    %cst_24 = arith.constant 9.99999997E-7 : f32
    %82 = vector.broadcast %cst_24 : f32 to vector<8x32xf32>
    %83 = arith.maximumf %81, %82 : vector<8x32xf32>
    %c2 = arith.constant 2 : index
    %c0_25 = arith.constant 0 : index
    %c0_26 = arith.constant 0 : index
    %84 = vector.load %arg2[%c2, %c0_25, %c0_26] : memref<3x96x64xf32, #tpu.memory_space<vmem>>, vector<1x96x64xf32>
    %85 = vector.shape_cast %84 : vector<1x96x64xf32> to vector<96x64xf32>
    %c2_27 = arith.constant 2 : index
    %c0_28 = arith.constant 0 : index
    %c0_29 = arith.constant 0 : index
    %86 = vector.load %arg3[%c2_27, %c0_28, %c0_29] : memref<3x1x64xf32, #tpu.memory_space<vmem>>, vector<1x1x64xf32>
    %87 = vector.shape_cast %86 : vector<1x1x64xf32> to vector<1x64xf32>
    %88 = arith.mulf %74, %74 : vector<8x32xf32>
    %89 = tpu.concatenate %74, %83, %88 in 1 : vector<8x32xf32>, vector<8x32xf32>, vector<8x32xf32> -> vector<8x96xf32>
    %cst_30 = arith.constant dense<0.000000e+00> : vector<8x64xf32>
    %90 = tpu.matmul %89, %85, %cst_30 {dimension_numbers = #tpu.dot_dimension_numbers<[1], [0], [0], [1], [0, 0, 1, 1], [], []>} : vector<8x96xf32>, vector<96x64xf32>, vector<8x64xf32> -> vector<8x64xf32>
    %91 = vector.broadcast %87 : vector<1x64xf32> to vector<8x64xf32>
    %92 = arith.addf %90, %91 : vector<8x64xf32>
    %93 = vector.extract_strided_slice %92 {offsets = [0, 0], sizes = [8, 1], strides = [1, 1]} : vector<8x64xf32> to vector<8x1xf32>
    %94 = vector.extract_strided_slice %92 {offsets = [0, 1], sizes = [8, 1], strides = [1, 1]} : vector<8x64xf32> to vector<8x1xf32>
    %cst_31 = arith.constant 0.392699093 : f32
    %95 = vector.broadcast %cst_31 : f32 to vector<8x1xf32>
    %96 = arith.mulf %95, %94 : vector<8x1xf32>
    %cst_32 = arith.constant 1.000000e+00 : f32
    %97 = vector.broadcast %cst_32 : f32 to vector<8x1xf32>
    %98 = arith.addf %97, %96 : vector<8x1xf32>
    %99 = math.rsqrt %98 : vector<8x1xf32>
    %100 = arith.mulf %93, %99 : vector<8x1xf32>
    %101 = arith.negf %100 : vector<8x1xf32>
    %102 = math.exp %101 : vector<8x1xf32>
    %cst_33 = arith.constant 1.000000e+00 : f32
    %103 = vector.broadcast %cst_33 : f32 to vector<8x1xf32>
    %104 = arith.addf %103, %102 : vector<8x1xf32>
    %105 = arith.divf %103, %104 : vector<8x1xf32>
    %cst_34 = arith.constant -0.881373584 : f32
    %106 = vector.broadcast %cst_34 : f32 to vector<8x1xf32>
    %107 = arith.addf %93, %106 : vector<8x1xf32>
    %cst_35 = arith.constant 1.17157292 : f32
    %108 = vector.broadcast %cst_35 : f32 to vector<8x1xf32>
    %109 = arith.mulf %108, %107 : vector<8x1xf32>
    %cst_36 = arith.constant 0.539012074 : f32
    %110 = vector.broadcast %cst_36 : f32 to vector<8x1xf32>
    %111 = arith.mulf %110, %94 : vector<8x1xf32>
    %cst_37 = arith.constant 1.000000e+00 : f32
    %112 = vector.broadcast %cst_37 : f32 to vector<8x1xf32>
    %113 = arith.addf %112, %111 : vector<8x1xf32>
    %114 = math.rsqrt %113 : vector<8x1xf32>
    %115 = arith.mulf %109, %114 : vector<8x1xf32>
    %116 = arith.negf %115 : vector<8x1xf32>
    %117 = math.exp %116 : vector<8x1xf32>
    %cst_38 = arith.constant 1.000000e+00 : f32
    %118 = vector.broadcast %cst_38 : f32 to vector<8x1xf32>
    %119 = arith.addf %118, %117 : vector<8x1xf32>
    %120 = arith.divf %118, %119 : vector<8x1xf32>
    %121 = arith.mulf %105, %105 : vector<8x1xf32>
    %122 = arith.subf %120, %121 : vector<8x1xf32>
    %cst_39 = arith.constant 0.000000e+00 : f32
    %123 = vector.broadcast %cst_39 : f32 to vector<8x1xf32>
    %124 = arith.maximumf %122, %123 : vector<8x1xf32>
    %125 = tpu.concatenate %105, %124 in 1 : vector<8x1xf32>, vector<8x1xf32> -> vector<8x2xf32>
    %c0_40 = arith.constant 0 : index
    %c0_41 = arith.constant 0 : index
    %126 = vector.load %arg4[%c0_40, %c0_41] : memref<8x2xf32, #tpu.memory_space<vmem>>, vector<8x2xf32>
    tpu.vector_store %arg4[%c0_40, %c0_41], %125 {strides = array<i32>} : memref<8x2xf32, #tpu.memory_space<vmem>>, vector<8x2xf32>,
    return
  }
  func.func @transform_0(%arg0: i32) -> (i32, i32) {
    %c0_i32 = arith.constant 0 : i32
    %c0_i32_0 = arith.constant 0 : i32
    return %arg0, %c0_i32 : i32, i32
  }
  func.func @transform_1(%arg0: i32) -> (i32, i32, i32) {
    %c0_i32 = arith.constant 0 : i32
    %c0_i32_0 = arith.constant 0 : i32
    %c0_i32_1 = arith.constant 0 : i32
    %c0_i32_2 = arith.constant 0 : i32
    return %c0_i32, %c0_i32_0, %c0_i32_1 : i32, i32, i32
  }
  func.func @transform_2(%arg0: i32) -> (i32, i32, i32) {
    %c0_i32 = arith.constant 0 : i32
    %c0_i32_0 = arith.constant 0 : i32
    %c0_i32_1 = arith.constant 0 : i32
    %c0_i32_2 = arith.constant 0 : i32
    return %c0_i32, %c0_i32_0, %c0_i32_1 : i32, i32, i32
  }
  func.func @transform_3(%arg0: i32) -> (i32, i32) {
    %c0_i32 = arith.constant 0 : i32
    %c0_i32_0 = arith.constant 0 : i32
    return %arg0, %c0_i32 : i32, i32
  }
}

</mosaic_0001>

<bundles_post_ra>
// kernel: npn_forward_batched.1
= control target key start
LH: loop header
LB: loop body
LE: loop exit
PB: predicated region body
PF: predicated region fallthrough
CT: control target
= control target key end

     0   :  { %v650_v1 = vmov 0.0   ;;  %vm651_vm0 = vmmov 0   ;;  %s652_s19 = smov 32   ;;  %s653_s24 = smov 64   ;;  %vm36_vm1 = vcmask 261120   ;;  %vm38_vm2 = vcmask 523264   ;;  %s881_s0 = inlined_call_operand.vmem [shape: f32[8,32], index: 0, kind: input, shape index: {}]   ;;  %s882_s1 = inlined_call_operand.vmem [shape: f32[3,96,64], index: 1, kind: input, shape index: {}]   ;;  %s883_s2 = inlined_call_operand.vmem [shape: f32[3,1,64], index: 2, kind: input, shape index: {}]   ;;  %s884_s3 = inlined_call_operand.vmem [shape: f32[8,2], index: 3, kind: output, shape index: {}]  }
   0x1   :  { %v14_v0 = vld [vmem:[%s881_s0] sm:$0xff]  ;;  %534 = vmatprep.subr.mxu0 %v650_v1  ;;  %v27_v2 = vld [vmem:[%s882_s1 + $0x58] sm:$0xff]  ;;  %v26_v3 = vld [vmem:[%s882_s1 + $0x50] sm:$0xff]  ;;  %558 = vmatprep.mubr.msk.f32.mxu0 %vm651_vm0, %v650_v1  ;;  %vm46_vm3 = vcmask 785408   ;;  %s654_s14 = smov 96   ;;  %vm451_vm4 = vcmask 7168  }
   0x2   :  { %v15_v4 = vmul.f32 %v14_v0, %v14_v0  ;;  %535 = vmatpush3.msra.mxu0 %v27_v2  ;;  %561 = vmatprep.subr.mxu1 %v650_v1  ;;  %v25_v5 = vld [vmem:[%s882_s1 + $0x48] sm:$0xff]  ;;  %v24_v6 = vld [vmem:[%s882_s1 + $0x40] sm:$0xff]  ;;  %v23_v7 = vld [vmem:[%s882_s1 + $0x38] sm:$0xff]  ;;  %vm453_vm5 = vcmask 15360  }
   0x3   :  { %536 = vmatprep.subr.mxu0 %v650_v1  ;;  %585 = vmatprep.mubr.msk.f32.mxu1 %vm651_vm0, %v650_v1  ;;  %v22_v8 = vld [vmem:[%s882_s1 + $0x30] sm:$0xff]  ;;  %v21_v9 = vld [vmem:[%s882_s1 + $0x28] sm:$0xff]  ;;  %v20_v10 = vld [vmem:[%s882_s1 + $0x20] sm:$0xff] }
   0x4   :  { %30 = vrot.lane.b32.xlu0 %v15_v4, %s652_s19  ;;  %537 = vmatpush3.msra.mxu0 %v26_v3  ;;  %v19_v11 = vld [vmem:[%s882_s1 + $0x18] sm:$0xff]  ;;  %v18_v12 = vld [vmem:[%s882_s1 + $0x10] sm:$0xff]  ;;  %v17_v13 = vld [vmem:[%s882_s1 + $0x8] sm:$0xff] }
   0x5   :  { %538 = vmatprep.subr.mxu0 %v650_v1  ;;  %v16_v14 = vld [vmem:[%s882_s1] sm:$0xff]  ;;  %v473_v32 = vld [vmem:[%s882_s1 + $0xb8] sm:$0xff]  ;;  %v472_v33 = vld [vmem:[%s882_s1 + $0xb0] sm:$0xff] }
   0x6   :  { %539 = vmatpush3.msra.mxu0 %v25_v5  ;;  %v459_v19 = vld [vmem:[%s883_s2] ss:$0 sm:$0xff]  ;;  %562 = vmatpush3.msra.mxu1 %v473_v32  ;;  %v471_v36 = vld [vmem:[%s882_s1 + $0xa8] sm:$0xff]  ;;  %v469_v39 = vld [vmem:[%s882_s1 + $0x98] sm:$0xff] }
   0x7   :  { %540 = vmatprep.subr.mxu0 %v650_v1  ;;  %563 = vmatprep.subr.mxu1 %v650_v1  ;;  %v470_v38 = vld [vmem:[%s882_s1 + $0xa0] sm:$0xff]  ;;  %v468_v40 = vld [vmem:[%s882_s1 + $0x90] sm:$0xff]  ;;  %v467_v41 = vld [vmem:[%s882_s1 + $0x88] sm:$0xff] }
   0x8   :  { %33 = vrot.lane.b32.xlu0 %v15_v4, %s653_s24  ;;  %541 = vmatpush3.msra.mxu0 %v24_v6  ;;  %v466_v42 = vld [vmem:[%s882_s1 + $0x80] sm:$0xff]  ;;  %v465_v43 = vld [vmem:[%s882_s1 + $0x78] sm:$0xff]  ;;  %v464_v48 = vld [vmem:[%s882_s1 + $0x70] sm:$0xff] }
   0x9   :  { %542 = vmatprep.subr.mxu0 %v650_v1  ;;  %564 = vmatpush3.msra.mxu1 %v472_v33  ;;  %v463_v49 = vld [vmem:[%s882_s1 + $0x68] sm:$0xff]  ;;  %v462_v52 = vld [vmem:[%s882_s1 + $0x60] sm:$0xff] }
   0xa   :  { %543 = vmatpush3.msra.mxu0 %v23_v7  ;;  %565 = vmatprep.subr.mxu1 %v650_v1  ;;  %v475_v5 = vld [vmem:[%s883_s2 + $0x1] ss:$0 sm:$0xff] }
   0xb   :  { %544 = vmatprep.subr.mxu0 %v650_v1  ;;  %566 = vmatpush3.msra.mxu1 %v471_v36 }
   0xc   :  { %545 = vmatpush3.msra.mxu0 %v22_v8  ;;  %567 = vmatprep.subr.mxu1 %v650_v1 }
   0xd   :  { %546 = vmatprep.subr.mxu0 %v650_v1  ;;  %568 = vmatpush3.msra.mxu1 %v470_v38  ;;  %v478_v38 = vld [vmem:[%s882_s1 + $0xc0] sm:$0xff] }
   0xe   :  { %547 = vmatpush3.msra.mxu0 %v21_v9  ;;  %569 = vmatprep.subr.mxu1 %v650_v1 }
   0xf   :  { %548 = vmatprep.subr.mxu0 %v650_v1  ;;  %570 = vmatpush3.msra.mxu1 %v469_v39 }
  0x10   :  { %549 = vmatpush3.msra.mxu0 %v20_v10  ;;  %571 = vmatprep.subr.mxu1 %v650_v1 }
  0x11   :  { %550 = vmatprep.subr.mxu0 %v650_v1  ;;  %572 = vmatpush3.msra.mxu1 %v468_v40 }
  0x12   :  { %551 = vmatpush3.msra.mxu0 %v19_v11  ;;  %573 = vmatprep.subr.mxu1 %v650_v1 }
  0x13   :  { %552 = vmatprep.subr.mxu0 %v650_v1  ;;  %574 = vmatpush3.msra.mxu1 %v467_v41 }
  0x14   :  { %553 = vmatpush3.msra.mxu0 %v18_v12  ;;  %575 = vmatprep.subr.mxu1 %v650_v1 }
  0x15   :  { %554 = vmatprep.subr.mxu0 %v650_v1  ;;  %576 = vmatpush3.msra.mxu1 %v466_v42 }
  0x16   :  { %555 = vmatpush3.msra.mxu0 %v17_v13  ;;  %577 = vmatprep.subr.mxu1 %v650_v1 }
  0x17   :  { %556 = vmatprep.subr.mxu0 %v650_v1  ;;  %578 = vmatpush3.msra.mxu1 %v465_v43 }
  0x18   :  { %557 = vmatpush3.msra.mxu0 %v16_v14  ;;  %579 = vmatprep.subr.mxu1 %v650_v1 }
  0x19   :  { %588 = vmatprep.subr.mxu0 %v650_v1  ;;  %580 = vmatpush3.msra.mxu1 %v464_v48 }
  0x1a   :  { %581 = vmatprep.subr.mxu1 %v650_v1 }
  0x1b   :  { %582 = vmatpush3.msra.mxu1 %v463_v49 }
  0x1c   :  { %583 = vmatprep.subr.mxu1 %v650_v1 }
  0x1d   :  { %584 = vmatpush3.msra.mxu1 %v462_v52 }
  0x76   :  { %v31_v15 = vpop.permute.xlu0 %30 }
  0x77   :  { %v37_v16 = vsel %vm36_vm1, %v14_v0, %v31_v15 }
  0x7a   :  { %v34_v17 = vpop.permute.xlu0 %33 }
  0x7b   :  { %v39_v18 = vsel %vm38_vm2, %v37_v16, %v34_v17 }
  0x7c   :  { %559 = vmatmul.mubr.msk.f32.vlgmr.msra.gmra.mxu0 %vm46_vm3, %v39_v18  ;;  %v489_v18 = vld [vmem:[%s882_s1 + $0x118] sm:$0xff] }
  0x7d   :  { %612 = vmatprep.mubr.msk.f32.mxu0 %vm651_vm0, %v650_v1  ;;  %589 = vmatpush3.msra.mxu0 %v489_v18 }
  0x7e   :  { %590 = vmatprep.subr.mxu0 %v650_v1 }
 0x13c   :  { %v116_v20 = vpop.f32.mrf.mxu0 }
 0x13d   :  { %v744_v21 = vadd.f32 %v459_v19, %v116_v20  ;;  %v488_v19 = vld [vmem:[%s882_s1 + $0x110] sm:$0xff] }
 0x13e   :  { %v560_v22 = vpop.f32.mrf.mxu0  ;;  %591 = vmatpush3.msra.mxu0 %v488_v19 }
 0x13f   :  { %v120_v23 = vmax.f32 %v744_v21, 1e-06  ;;  %v151_v53 = vmul.f32 %v744_v21, %v744_v21  ;;  %v487_v22 = vld [vmem:[%s882_s1 + $0x108] sm:$0xff]  ;;  %592 = vmatprep.subr.mxu0 %v650_v1 }
 0x140   :  { %593 = vmatpush3.msra.mxu0 %v487_v22 }
 0x141   :  { %153 = vrot.lane.b32.xlu0 %v120_v23, %s654_s14  ;;  %622 = vrsqrt.f32 %v120_v23  ;;  %594 = vmatprep.subr.mxu0 %v650_v1 }
 0x14e   :  { %v623_v24 = vpop.eup %622 }
 0x14f   :  { %123 = vrot.lane.b32.xlu1 %v623_v24, %s654_s14  ;;  %v134_v25 = vmul.f32 %v623_v24, %v120_v23  ;;  %v486_v24 = vld [vmem:[%s882_s1 + $0x100] sm:$0xff] }
 0x150   :  { %595 = vmatpush3.msra.mxu0 %v486_v24 }
 0x151   :  { %v135_v34 = vmul.f32 0.3989423, %v134_v25  ;;  %v485_v25 = vld [vmem:[%s882_s1 + $0xf8] sm:$0xff]  ;;  %596 = vmatprep.subr.mxu0 %v650_v1 }
 0x152   :  { %597 = vmatpush3.msra.mxu0 %v485_v25 }
 0x153   :  { %598 = vmatprep.subr.mxu0 %v650_v1 }
 0x1b3   :  { %v154_v51 = vpop.permute.xlu0 %153 }
 0x1b4   :  { %v156_v54 = vadd.f32 %v154_v51, %v151_v53  ;;  %v491_v53 = vld [vmem:[%s883_s2 + $0x2] ss:$0 sm:$0xff]  ;;  %s656_s2 = smov 1  }
 0x1c1   :  { %v124_v26 = vpop.permute.xlu1 %123 }
 0x1c2   :  { %v126_v27 = vmul.f32 %v124_v26, %v744_v21  ;;  %v484_v26 = vld [vmem:[%s882_s1 + $0xf0] sm:$0xff] }
 0x1c3   :  { %599 = vmatpush3.msra.mxu0 %v484_v26 }
 0x1c4   :  { %v136_v28 = vmul.f32 -0.5, %v126_v27  ;;  %v461_v44 = vmul.f32 -1.5957692, %v126_v27  ;;  %600 = vmatprep.subr.mxu0 %v650_v1 }
 0x1c6   :  { %v137_v29 = vmul.f32 %v136_v28, %v126_v27  ;;  %v129_v45 = vmul.f32 1.442695, %v461_v44  ;;  %v483_v27 = vld [vmem:[%s882_s1 + $0xe8] sm:$0xff]  ;;  %v482_v28 = vld [vmem:[%s882_s1 + $0xe0] sm:$0xff] }
 0x1c7   :  { %601 = vmatpush3.msra.mxu0 %v483_v27 }
 0x1c8   :  { %v138_v30 = vmul.f32 1.442695, %v137_v29  ;;  %602 = vmatprep.subr.mxu0 %v650_v1  ;;  %v481_v29 = vld [vmem:[%s882_s1 + $0xd8] sm:$0xff] }
 0x1c9   :  { %603 = vmatpush3.msra.mxu0 %v482_v28 }
 0x1ca   :  { %624 = vpow2.f32 %v138_v30  ;;  %604 = vmatprep.subr.mxu0 %v650_v1 }
 0x1cb   :  { %626 = vpow2.f32 %v129_v45  ;;  %605 = vmatpush3.msra.mxu0 %v481_v29 }
 0x1cc   :  { %606 = vmatprep.subr.mxu0 %v650_v1 }
 0x1d7   :  { %v625_v31 = vpop.eup %624 }
 0x1d8   :  { %141 = vrot.lane.b32.xlu1 %v625_v31, %s652_s19  ;;  %v627_v46 = vpop.eup %626 }
 0x1d9   :  { %v131_v47 = vadd.f32 1.0, %v627_v46 }
 0x1db   :  { %628 = vrcp.f32 %v131_v47 }
 0x1e8   :  { %v629_v50 = vpop.eup %628 }
 0x1e9   :  { %v145_v55 = vmul.f32 %v629_v50, %v744_v21  ;;  %v157_v57 = vmul.f32 %v629_v50, %v156_v54 }
 0x24a   :  { %v142_v35 = vpop.permute.xlu1 %141 }
 0x24b   :  { %v144_v37 = vmul.f32 %v142_v35, %v135_v34  ;;  %v480_v34 = vld [vmem:[%s882_s1 + $0xd0] sm:$0xff]  ;;  %v479_v35 = vld [vmem:[%s882_s1 + $0xc8] sm:$0xff] }
 0x24c   :  { %607 = vmatpush3.msra.mxu0 %v480_v34 }
 0x24d   :  { %147 = vrot.lane.b32.xlu1 %v144_v37, %s654_s14  ;;  %608 = vmatprep.subr.mxu0 %v650_v1 }
 0x24e   :  { %609 = vmatpush3.msra.mxu0 %v479_v35 }
 0x24f   :  { %610 = vmatprep.subr.mxu0 %v650_v1 }
 0x250   :  { %611 = vmatpush3.msra.mxu0 %v478_v38 }
 0x2bf   :  { %v148_v56 = vpop.permute.xlu1 %147 }
 0x2c0   :  { %v150_v58 = vadd.f32 %v148_v56, %v145_v55  ;;  %v158_v59 = vmul.f32 %v148_v56, %v744_v21 }
 0x2c2   :  { %v159_v60 = vadd.f32 %v158_v59, %v157_v57  ;;  %v160_v61 = vmul.f32 %v150_v58, %v150_v58 }
 0x2c4   :  { %183 = vrot.lane.b32.xlu1 %v160_v61, %s653_s24  ;;  %v161_v62 = vsub.f32 %v159_v60, %v160_v61 }
 0x2c6   :  { %v162_v63 = vmax.f32 %v161_v62, 1e-06 }
 0x2c8   :  { %179 = vrot.lane.b32.xlu0 %v162_v63, %s652_s19 }
 0x336   :  { %v184_v2 = vpop.permute.xlu1 %183 }
 0x33a   :  { %v180_v0 = vpop.permute.xlu0 %179 }
 0x33b   :  { %v186_v3 = vsel %vm36_vm1, %v150_v58, %v180_v0 }
 0x33c   :  { %v187_v4 = vsel %vm38_vm2, %v186_v3, %v184_v2 }
 0x33d   :  { %586 = vmatmul.mubr.msk.f32.vlgmr.msra.gmra.mxu1 %vm46_vm3, %v187_v4 }
 0x3fd   :  { %v263_v6 = vpop.f32.mrf.mxu1 }
 0x3fe   :  { %v811_v7 = vadd.f32 %v475_v5, %v263_v6 }
 0x3ff   :  { %v587_v8 = vpop.f32.mrf.mxu1 }
 0x400   :  { %v267_v9 = vmax.f32 %v811_v7, 1e-06  ;;  %v298_v39 = vmul.f32 %v811_v7, %v811_v7 }
 0x402   :  { %630 = vrsqrt.f32 %v267_v9 }
 0x40f   :  { %v631_v10 = vpop.eup %630 }
 0x410   :  { %270 = vrot.lane.b32.xlu0 %v631_v10, %s654_s14  ;;  %v281_v11 = vmul.f32 %v631_v10, %v267_v9 }
 0x412   :  { %v282_v20 = vmul.f32 0.3989423, %v281_v11 }
 0x414   :  { %300 = vrot.lane.b32.xlu0 %v267_v9, %s654_s14 }
 0x482   :  { %v271_v12 = vpop.permute.xlu0 %270 }
 0x483   :  { %v273_v13 = vmul.f32 %v271_v12, %v811_v7 }
 0x485   :  { %v283_v14 = vmul.f32 -0.5, %v273_v13  ;;  %v477_v30 = vmul.f32 -1.5957692, %v273_v13 }
 0x486   :  { %v301_v37 = vpop.permute.xlu0 %300 }
 0x487   :  { %v284_v15 = vmul.f32 %v283_v14, %v273_v13  ;;  %v276_v31 = vmul.f32 1.442695, %v477_v30  ;;  %v303_v40 = vadd.f32 %v301_v37, %v298_v39 }
 0x489   :  { %v285_v16 = vmul.f32 1.442695, %v284_v15 }
 0x48b   :  { %632 = vpow2.f32 %v285_v16 }
 0x48c   :  { %634 = vpow2.f32 %v276_v31 }
 0x498   :  { %v633_v17 = vpop.eup %632 }
 0x499   :  { %288 = vrot.lane.b32.xlu1 %v633_v17, %s652_s19  ;;  %v635_v32 = vpop.eup %634 }
 0x49a   :  { %v278_v33 = vadd.f32 1.0, %v635_v32 }
 0x49c   :  { %636 = vrcp.f32 %v278_v33 }
 0x4a9   :  { %v637_v36 = vpop.eup %636 }
 0x4aa   :  { %v292_v41 = vmul.f32 %v637_v36, %v811_v7  ;;  %v304_v43 = vmul.f32 %v637_v36, %v303_v40 }
 0x50b   :  { %v289_v21 = vpop.permute.xlu1 %288 }
 0x50c   :  { %v291_v23 = vmul.f32 %v289_v21, %v282_v20 }
 0x50e   :  { %294 = vrot.lane.b32.xlu1 %v291_v23, %s654_s14 }
 0x580   :  { %v295_v42 = vpop.permute.xlu1 %294 }
 0x581   :  { %v297_v44 = vadd.f32 %v295_v42, %v292_v41  ;;  %v305_v45 = vmul.f32 %v295_v42, %v811_v7 }
 0x583   :  { %v306_v46 = vadd.f32 %v305_v45, %v304_v43  ;;  %v307_v1 = vmul.f32 %v297_v44, %v297_v44 }
 0x585   :  { %330 = vrot.lane.b32.xlu1 %v307_v1, %s653_s24  ;;  %v308_v47 = vsub.f32 %v306_v46, %v307_v1 }
 0x587   :  { %v309_v48 = vmax.f32 %v308_v47, 1e-06 }
 0x589   :  { %326 = vrot.lane.b32.xlu0 %v309_v48, %s652_s19  ;;  %s655_s19 = smov 127  }
 0x5f7   :  { %v331_v50 = vpop.permute.xlu1 %330 }
 0x5fb   :  { %v327_v49 = vpop.permute.xlu0 %326 }
 0x5fc   :  { %v333_v51 = vsel %vm36_vm1, %v297_v44, %v327_v49 }
 0x5fd   :  { %v334_v52 = vsel %vm38_vm2, %v333_v51, %v331_v50 }
 0x5fe   :  { %613 = vmatmul.mubr.msk.f32.vlgmr.msra.gmra.mxu0 %vm46_vm3, %v334_v52 }
 0x6be   :  { %v410_v54 = vpop.f32.mrf.mxu0 }
 0x6bf   :  { %v411_v55 = vadd.f32 %v491_v53, %v410_v54 }
 0x6c0   :  { %v614_v56 = vpop.f32.mrf.mxu0 }
 0x6c1   :  { %v414_v57 = vmul.f32 0.3926991, %v411_v55  ;;  %v430_v58 = vmul.f32 0.5390121, %v411_v55  ;;  %v428_v63 = vadd.f32 -0.8813736, %v411_v55 }
 0x6c3   :  { %v415_v59 = vadd.f32 1.0, %v414_v57  ;;  %v431_v60 = vadd.f32 1.0, %v430_v58  ;;  %v429_v0 = vmul.f32 1.1715729, %v428_v63 }
 0x6c5   :  { %638 = vrsqrt.f32 %v415_v59 }
 0x6c6   :  { %640 = vrsqrt.f32 %v431_v60 }
 0x6d2   :  { %v639_v61 = vpop.eup %638 }
 0x6d3   :  { %v641_v62 = vpop.eup %640  ;;  %418 = vrot.lane.b32.xlu0 %v639_v61, %s655_s19 }
 0x6d4   :  { %434 = vrot.lane.b32.xlu1 %v641_v62, %s655_s19 }
 0x745   :  { %v419_v2 = vpop.permute.xlu0 %418 }
 0x746   :  { %v435_v3 = vpop.permute.xlu1 %434  ;;  %v421_v4 = vmul.f32 %v419_v2, %v411_v55 }
 0x747   :  { %v437_v5 = vmul.f32 %v435_v3, %v429_v0 }
 0x748   :  { %v493_v6 = vmul.f32 -1.442695, %v421_v4 }
 0x749   :  { %v494_v7 = vmul.f32 -1.442695, %v437_v5 }
 0x74a   :  { %642 = vpow2.f32 %v493_v6 }
 0x74b   :  { %644 = vpow2.f32 %v494_v7 }
 0x757   :  { %v643_v8 = vpop.eup %642 }
 0x758   :  { %v645_v9 = vpop.eup %644  ;;  %v425_v10 = vadd.f32 1.0, %v643_v8 }
 0x759   :  { %v441_v11 = vadd.f32 1.0, %v645_v9 }
 0x75a   :  { %646 = vrcp.f32 %v425_v10 }
 0x75b   :  { %648 = vrcp.f32 %v441_v11 }
 0x767   :  { %v647_v12 = vpop.eup %646 }
 0x768   :  { %v444_v13 = vmul.f32 %v647_v12, %v647_v12  ;;  %v649_v14 = vpop.eup %648 }
 0x76a   :  { %v445_v15 = vsub.f32 %v649_v14, %v444_v13 }
 0x76c   :  { %v446_v16 = vmax.f32 %v445_v15, 0.0 }
 0x76e   :  { %448 = vrot.lane.b32.xlu0 %v446_v16, %s656_s2 }
 0x7e0   :  { %v449_v17 = vpop.permute.xlu0 %448 }
 0x7e1   :  { %v452_v18 = vsel %vm451_vm4, %v647_v12, %v449_v17 }
 0x7e2   :  { %454 = vst.msk [vmem:[%s884_s3] sm:$0xff] %vm453_vm5, %v452_v18 }

</bundles_post_ra>
